<compile_context>
chip_gen: v7x
topology: tpu7x:2x2x1
jax: 0.10.0
libtpu: 0.0.40
codegen_flags: <defaults>
</compile_context>

<pallas_src>
import jax
import jax.numpy as jnp
import numpy as np
from jax.experimental import pallas as pl
from jax.experimental.pallas import tpu as pltpu

K = 2  # number of linear pieces (module default)
# Registered buffers from LangDyReLU.__init__ -> deterministic constants, baked in.
LAMBDAS = [1.0] * K + [0.5] * K          # torch.Tensor([1.0]*k + [0.5]*k)
INIT_V = [1.0] + [0.0] * (2 * K - 1)     # torch.Tensor([1.0] + [0.0]*(2k-1))


def _dyrelu_pointwise_kernel(x_ref, a_ref, b_ref, o_ref):
    # x_ref: (1, Lt, Cf)   feature tile (lane-dense layout)
    # a_ref: (1, K, Cf)    per-channel slopes for this batch element
    # b_ref: (1, K, Cf)    per-channel intercepts for this batch element
    # o_ref: (1, Lt, Cf)
    x = x_ref[...]
    a = a_ref[...]
    b = b_ref[...]
    res = x * a[:, 0:1, :] + b[:, 0:1, :]
    for j in range(1, K):
        res = jnp.maximum(res, x * a[:, j:j + 1, :] + b[:, j:j + 1, :])
    o_ref[...] = res


def _choose_l_tile(lf, cf):
    """LEN tile: ~1-2 MiB f32 per block, multiple of 8 sublanes, divides lf."""
    target = max(8, (1 << 21) // (4 * cf))   # rows giving ~2 MiB f32
    if lf <= target:
        return lf
    t = (target // 8) * 8
    while t >= 8:
        if lf % t == 0:
            return t
        t -= 8
    return lf  # fallback: whole sequence in one block


def lang_dyrelu_c(x, q, w1, b1, w2, b2):
    """LangDyReLUC forward.
    x: (B, LEN, C) f32, q: (B, Q) f32.
    w1: (Q, H), b1: (1, H) or (H,), w2: (H, 2K*C), b2: (1, 2K*C) or (2K*C,)
    with w2/b2 columns in PyTorch order (c*2K + j)."""
    B, L, C = x.shape

    # --- MLP / coefficient computation, batched over B (plain JAX -> proper MXU
    #     use instead of per-grid-step 1-row matmuls inside the kernel).
    theta = jnp.maximum(q @ w1 + b1, 0.0)
    theta = 2.0 * jax.nn.sigmoid(theta @ w2 + b2) - 1.0           # (B, 2K*C)
    lam = jnp.array(LAMBDAS, jnp.float32)
    iv = jnp.array(INIT_V, jnp.float32)
    relu_coefs = theta.reshape(B, C, 2 * K) * lam + iv            # (B, C, 2K)
    slopes = jnp.transpose(relu_coefs[:, :, :K], (0, 2, 1))       # (B, K, C)
    inters = jnp.transpose(relu_coefs[:, :, K:], (0, 2, 1))       # (B, K, C)

    # --- Lane-dense packing: fold r consecutive LEN rows into the lane axis when
    #     C < 128 so output stores are full-width (no masked partial stores).
    r = 1
    if C < 128 and 128 % C == 0 and L % (128 // C) == 0:
        r = 128 // C
    Lf, Cf = L // r, r * C
    x_f = x.reshape(B, Lf, Cf)
    if r > 1:
        slopes = jnp.tile(slopes, (1, 1, r))                      # (B, K, Cf)
        inters = jnp.tile(inters, (1, 1, r))

    lt = _choose_l_tile(Lf, Cf)
    grid = (B, Lf // lt)

    out_f = pl.pallas_call(
        _dyrelu_pointwise_kernel,
        out_shape=jax.ShapeDtypeStruct((B, Lf, Cf), jnp.float32),
        grid=grid,
        in_specs=[
            pl.BlockSpec((1, lt, Cf), lambda b, l: (b, l, 0)),    # x tile
            pl.BlockSpec((1, K, Cf), lambda b, l: (b, 0, 0)),     # slopes (per batch)
            pl.BlockSpec((1, K, Cf), lambda b, l: (b, 0, 0)),     # intercepts (per batch)
        ],
        out_specs=pl.BlockSpec((1, lt, Cf), lambda b, l: (b, l, 0)),
        compiler_params=pltpu.CompilerParams(
            dimension_semantics=("parallel", "parallel"),
            vmem_limit_bytes=32 * 1024 * 1024,
        ),
    )(x_f, slopes, inters)

    return out_f.reshape(B, L, C)


def reference(x, q, w1, b1, w2, b2):
    """Pure-JAX transcription of LangDyReLUC.forward (PyTorch semantics)."""
    B, L, C = x.shape
    theta = jnp.maximum(q @ w1 + b1, 0.0)
    theta = 2.0 * jax.nn.sigmoid(theta @ w2 + b2) - 1.0
    lam = jnp.array(LAMBDAS, jnp.float32)
    iv = jnp.array(INIT_V, jnp.float32)
    relu_coefs = theta.reshape(B, C, 2 * K) * lam + iv                  # (B, C, 2k)
    x_perm = jnp.transpose(x, (1, 0, 2))[..., None]                     # (L, B, C, 1)
    out = x_perm * relu_coefs[:, :, :K] + relu_coefs[:, :, K:]          # (L, B, C, k)
    return jnp.transpose(jnp.max(out, axis=-1), (1, 0, 2))              # (B, L, C)


if __name__ == "__main__":
    B, LEN, C = 2, 8, 32          # channels = x.shape[2]
    Q_DIM = 32
    REDUCTION = 4
    H = C // REDUCTION            # fc1 output dim

    key = jax.random.PRNGKey(0)
    kx, kq, kw1, kb1, kw2, kb2 = jax.random.split(key, 6)

    x = jax.random.normal(kx, (B, LEN, C), jnp.float32)
    q = jax.random.normal(kq, (B, Q_DIM), jnp.float32)

    # Deterministic synthetic parameters (in (fan_in, fan_out) orientation).
    w1 = 0.2 * jax.random.normal(kw1, (Q_DIM, H), jnp.float32)
    b1 = 0.1 * jax.random.normal(kb1, (1, H), jnp.float32)
    w2 = 0.2 * jax.random.normal(kw2, (H, 2 * K * C), jnp.float32)   # PyTorch column order
    b2 = 0.1 * jax.random.normal(kb2, (1, 2 * K * C), jnp.float32)

    out = lang_dyrelu_c(x, q, w1, b1, w2, b2)
    out = jax.block_until_ready(out)

    ref = reference(x, q, w1, b1, w2, b2)
    np.testing.assert_allclose(np.asarray(out), np.asarray(ref), rtol=1e-5, atol=1e-5)
    print("KERNEL_OK")
</pallas_src>

<mosaic_0001>
module attributes {stable_mosaic.version = 11 : i64} {
  func.func @_dyrelu_pointwise_kernel(%arg0: i32, %arg1: i32, %arg2: memref<1x2x128xf32, #tpu.memory_space<vmem>>, %arg3: memref<1x2x128xf32, #tpu.memory_space<vmem>>, %arg4: memref<1x2x128xf32, #tpu.memory_space<vmem>>, %arg5: memref<1x2x128xf32, #tpu.memory_space<vmem>>) attributes {dimension_semantics = [#tpu.dimension_semantics<parallel>, #tpu.dimension_semantics<parallel>], iteration_bounds = array<i64: 2, 1>, scalar_prefetch = 0 : i64, scratch_operands = 0 : i64, tpu.core_type = #tpu.core_type<tc>, window_params = [{transform_indices = @transform_0, window_bounds = array<i64: 1, 2, 128>}, {transform_indices = @transform_1, window_bounds = array<i64: 1, 2, 128>}, {transform_indices = @transform_2, window_bounds = array<i64: 1, 2, 128>}, {transform_indices = @transform_3, window_bounds = array<i64: 1, 2, 128>}]} {
    %c0 = arith.constant 0 : index
    %c0_0 = arith.constant 0 : index
    %c0_1 = arith.constant 0 : index
    %0 = vector.load %arg2[%c0, %c0_0, %c0_1] : memref<1x2x128xf32, #tpu.memory_space<vmem>>, vector<1x2x128xf32>
    %c0_2 = arith.constant 0 : index
    %c0_3 = arith.constant 0 : index
    %c0_4 = arith.constant 0 : index
    %1 = vector.load %arg3[%c0_2, %c0_3, %c0_4] : memref<1x2x128xf32, #tpu.memory_space<vmem>>, vector<1x2x128xf32>
    %c0_5 = arith.constant 0 : index
    %c0_6 = arith.constant 0 : index
    %c0_7 = arith.constant 0 : index
    %2 = vector.load %arg4[%c0_5, %c0_6, %c0_7] : memref<1x2x128xf32, #tpu.memory_space<vmem>>, vector<1x2x128xf32>
    %3 = vector.extract_strided_slice %1 {offsets = [0, 0, 0], sizes = [1, 1, 128], strides = [1, 1, 1]} : vector<1x2x128xf32> to vector<1x1x128xf32>
    %4 = vector.broadcast %3 : vector<1x1x128xf32> to vector<1x2x128xf32>
    %5 = arith.mulf %0, %4 : vector<1x2x128xf32>
    %6 = vector.extract_strided_slice %2 {offsets = [0, 0, 0], sizes = [1, 1, 128], strides = [1, 1, 1]} : vector<1x2x128xf32> to vector<1x1x128xf32>
    %7 = vector.broadcast %6 : vector<1x1x128xf32> to vector<1x2x128xf32>
    %8 = arith.addf %5, %7 : vector<1x2x128xf32>
    %9 = vector.extract_strided_slice %1 {offsets = [0, 1, 0], sizes = [1, 1, 128], strides = [1, 1, 1]} : vector<1x2x128xf32> to vector<1x1x128xf32>
    %10 = vector.broadcast %9 : vector<1x1x128xf32> to vector<1x2x128xf32>
    %11 = arith.mulf %0, %10 : vector<1x2x128xf32>
    %12 = vector.extract_strided_slice %2 {offsets = [0, 1, 0], sizes = [1, 1, 128], strides = [1, 1, 1]} : vector<1x2x128xf32> to vector<1x1x128xf32>
    %13 = vector.broadcast %12 : vector<1x1x128xf32> to vector<1x2x128xf32>
    %14 = arith.addf %11, %13 : vector<1x2x128xf32>
    %15 = arith.maximumf %8, %14 : vector<1x2x128xf32>
    %c0_8 = arith.constant 0 : index
    %c0_9 = arith.constant 0 : index
    %c0_10 = arith.constant 0 : index
    %16 = vector.load %arg5[%c0_8, %c0_9, %c0_10] : memref<1x2x128xf32, #tpu.memory_space<vmem>>, vector<1x2x128xf32>
    tpu.vector_store %arg5[%c0_8, %c0_9, %c0_10], %15 {strides = array<i32>} : memref<1x2x128xf32, #tpu.memory_space<vmem>>, vector<1x2x128xf32>,
    return
  }
  func.func @transform_0(%arg0: i32, %arg1: i32) -> (i32, i32, i32) {
    %c0_i32 = arith.constant 0 : i32
    %c0_i32_0 = arith.constant 0 : i32
    return %arg0, %arg1, %c0_i32 : i32, i32, i32
  }
  func.func @transform_1(%arg0: i32, %arg1: i32) -> (i32, i32, i32) {
    %c0_i32 = arith.constant 0 : i32
    %c0_i32_0 = arith.constant 0 : i32
    %c0_i32_1 = arith.constant 0 : i32
    return %arg0, %c0_i32, %c0_i32_0 : i32, i32, i32
  }
  func.func @transform_2(%arg0: i32, %arg1: i32) -> (i32, i32, i32) {
    %c0_i32 = arith.constant 0 : i32
    %c0_i32_0 = arith.constant 0 : i32
    %c0_i32_1 = arith.constant 0 : i32
    return %arg0, %c0_i32, %c0_i32_0 : i32, i32, i32
  }
  func.func @transform_3(%arg0: i32, %arg1: i32) -> (i32, i32, i32) {
    %c0_i32 = arith.constant 0 : i32
    %c0_i32_0 = arith.constant 0 : i32
    return %arg0, %arg1, %c0_i32 : i32, i32, i32
  }
}

</mosaic_0001>

<bundles_post_ra>
// kernel: tpu_custom_call.1
= control target key start
LH: loop header
LB: loop body
LE: loop exit
PB: predicated region body
PF: predicated region fallthrough
CT: control target
= control target key end

     0   :  { %8 = vsyncpa [#allocation3], 0  ;;  %s897_s0 = inlined_call_operand.hbm [shape: f32[2,2,128], index: 0, kind: input, shape index: {}]   ;;  %s898_s1 = inlined_call_operand.hbm [shape: f32[2,2,128], index: 1, kind: input, shape index: {}]   ;;  %s899_s2 = inlined_call_operand.vmem [shape: f32[2,2,128], index: 2, kind: input, shape index: {}]   ;;  %s900_s3 = inlined_call_operand.hbm [shape: f32[2,2,128], index: 3, kind: output, shape index: {}]  }
   0x1   :  { %10 = vsyncpa [#allocation3 + $0x1], 0 }
   0x2   :  { %11 = vsyncpa [#allocation6], 0 }
   0x3   :  { %13 = vsyncpa [#allocation6 + $0x1], 0 }
   0x4   :  { %14 = vsyncpa [#allocation4], 0 }
   0x5   :  { %16 = vsyncpa [#allocation4 + $0x1], 0  ;;  %s667_s12 = smov 0   ;;  %s669_s13 = smov 0  }
   0x6   :  { %s671_s14 = smov 0   ;;  %s673_s15 = smov 0  }
   0x7   :  { %s675_s16 = smov 0   ;;  %s677_s17 = smov 0  }
   0x8 LB: > { %s412_s18 = sadd.s32 4294967295, %s642_s17   ;;  %s413_s19 = sadd.s32 4294967294, %s642_s17   ;;  %s642_s17 = sphi %s677_s17, %s22_s17   ;;  %s638_s16 = sphi %s675_s16, %s920_s16   ;;  %s634_s15 = sphi %s673_s15, %s919_s15   ;;  %s630_s14 = sphi %s671_s14, %s918_s14   ;;  %s626_s13 = sphi %s669_s13, %s917_s13   ;;  %s622_s12 = sphi %s667_s12, %s916_s12  }
   0x9   : > { %s34_s20 = sadd.s32 1, %s638_s16  ;;  %s43_s21 = sadd.s32 1, %s630_s14 }
   0xa   : > { %p36_p0 = scmp.ge.s32.totalorder %s34_s20, 2  ;;  %p50_p1 = scmp.ne.s32.totalorder %s630_s14, %s626_s13 }
   0xb   : > { %p51_p2 = scmp.eq.s32.totalorder %s642_s17, 0  ;;  %p56_p3 = scmp.ne.s32.totalorder %s626_s13, %s622_s12 }
   0xc   : > { %s922_s20 = smov (%p36_p0, %s34_s20), 0  ;;  %p57_p5 = scmp.eq.s32.totalorder %s412_s18, 0 }
   0xd   : > { %p708_p4 = por %p51_p2, %p50_p1  ;;  %s38_s23 = ssub.s32 %s638_s16, %s922_s20 }
   0xe   : > { %p134_p6 = scmp.eq.s32.totalorder %s412_s18, 1  ;;  %p41_p7 = scmp.eq.s32.totalorder %s38_s23, 0 }
   0xf   : > { %p714_p8 = por %p57_p5, %p56_p3  ;;  %p140_p10 = scmp.eq.s32.totalorder %s413_s19, 1 }
  0x10   : > { %p718_p9 = por %p134_p6, %p50_p1  ;;  %p446_p13 = scmp.lt.s32.totalorder %s642_s17, 2 }
  0x11   : > { %s904_s24 = scalar_select %p714_p8, 1, 0 }
  0x12   : > { %s905_s25 = scalar_select %p718_p9, 1, 0 }
  0x13   : > { %s723_s26 = scalar_select %p41_p7, %s630_s14, %s43_s21  }
  0x14   : > { %p725_p11 = por %p140_p10, %p56_p3  ;;  %s732_s28 = sand.u32 1, %s630_s14  }
  0x15   : > { %s416_s29 = sshll.u32 %s732_s28, 1  ;;  %s417_s30 = sshll.u32 %s638_s16, 5 }
  0x16   : > { %s906_s27 = scalar_select %p725_p11, 1, 0 }
  0x17   : > { %s741_s6 = scalar_lea.hbm %s897_s0, %s417_s30  ;;  %s164_s7 = scalar_lea.vmem [#allocation2], %s416_s29 }
  0x18   : > { %s172_s8 = sshll.u32 %s164_s7, 4  ;;  %p749_p0 = pnand %p446_p13, %p708_p4  ;;  %s745_s8 = int_to_ptr.vmem [resolvable:$true] %s172_s8 }
  0x19   : > { %s161_s10 = scalar_lea.sflag [#allocation3], %s732_s28  ;;  %s496_s11 = scalar_lea.hbm %s741_s6, 32 }
  0x1a   : > { %p497_p3 = scmp.ne.s32.totalorder %s741_s6, %s496_s11  ;;  %p498_p5 = pneg %p749_p0 }
  0x1b   : > { %s501_s21 = scalar_lea.hbm %s897_s0, 64  ;;  %p502_p4 = scmp.lt.u32.totalorder %s741_s6, %s897_s0 }
  0x1c   : > { %p499_p6 = pnand %p498_p5, %p497_p3  ;;  %p503_p10 = scmp.lt.u32.totalorder %s501_s21, %s496_s11 }
  0x1d   : > { %p505_p12 = scmp.lt.u32.totalorder %s496_s11, %s741_s6 }
  0x1e   : > { %p500_p7 = pneg %p499_p6  ;;  %p504_p13 = por %p503_p10, %p502_p4 }
  0x20   : > { %p506_p1 = por %p505_p12, %p504_p13 }
  0x22   : > { %p507_p2 = pnand %p506_p1, %p500_p7 }
  0x24   : > { %510 = shalt.err (!%p507_p2)
}
  0x25   : > { %s511_s4 = scalar_lea.vmem %s745_s8, 32  ;;  %s644_s5 = smov [#allocation2]  }
  0x26   : > { %p512_p3 = scmp.ne.s32.totalorder %s745_s8, %s511_s4  ;;  %s516_s7 = sshll.u32 %s644_s5, 4  ;;  %s517_s7 = int_to_ptr.vmem [resolvable:$false] %s516_s7 }
  0x27   : > { %s518_s18 = scalar_lea.vmem %s517_s7, 64  ;;  %p519_p9 = scmp.lt.s32.totalorder %s745_s8, %s517_s7 }
  0x28   : > { %p514_p6 = pnand %p512_p3, %p498_p5  ;;  %p520_p4 = scmp.lt.s32.totalorder %s518_s18, %s511_s4 }
  0x2a   : > { %p515_p11 = pneg %p514_p6  ;;  %p521_p10 = por %p520_p4, %p519_p9 }
  0x2c   : > { %p522_p12 = pnand %p521_p10, %p515_p11 }
  0x2e   : > { %525 = shalt.err (!%p522_p12)
}
  0x2f   : > { %438 = dma.hbm_to_vmem [thread:$0]  (!%p749_p0), %s741_s6, 32, %s745_s8, %s161_s10  }
  0x30   : > { %p908_p1 = scmp.lt.s32.totalorder %s642_s17, 3  ;;  %p909_p2 = scmp.ge.s32.totalorder %s642_s17, 1 }
  0x31   : > { %s794_s22 = scalar_lea.hbm %s898_s1, %s417_s30  ;;  %s183_s23 = scalar_lea.vmem [#allocation5], %s416_s29 }
  0x32   : > { %p785_p7 = pnand %p909_p2, %p908_p1  ;;  %s190_s4 = sshll.u32 %s183_s23, 4  ;;  %s191_s4 = int_to_ptr.vmem [resolvable:$true] %s190_s4 }
  0x33   : > { %s180_s6 = scalar_lea.sflag [#allocation6], %s732_s28  ;;  %s526_s8 = scalar_lea.hbm %s794_s22, 32 }
  0x34   : > { %s910_s11 = scalar_select %p785_p7, 1, 0 }
  0x35   : > { %p527_p9 = scmp.ne.s32.totalorder %s794_s22, %s526_s8  ;;  %s531_s30 = scalar_lea.hbm %s898_s1, 64 }
  0x36   : > { %p532_p3 = scmp.lt.u32.totalorder %s794_s22, %s898_s1  ;;  %p533_p6 = scmp.lt.u32.totalorder %s531_s30, %s526_s8 }
  0x37   : > { %p529_p11 = pnand %p527_p9, %p498_p5  ;;  %p535_p10 = scmp.lt.u32.totalorder %s526_s8, %s794_s22 }
  0x38   : > { %p534_p4 = por %p533_p6, %p532_p3 }
  0x39   : > { %p530_p13 = pneg %p529_p11 }
  0x3a   : > { %p536_p12 = por %p535_p10, %p534_p4 }
  0x3c   : > { %p537_p1 = pnand %p536_p12, %p530_p13 }
  0x3e   : > { %540 = shalt.err (!%p537_p1)
}
  0x3f   : > { %s541_s28 = scalar_lea.vmem %s191_s4, 32  ;;  %s645_s29 = smov [#allocation5]  }
  0x40   : > { %p542_p2 = scmp.ne.s32.totalorder %s191_s4, %s541_s28  ;;  %s546_s19 = sshll.u32 %s645_s29, 4  ;;  %s547_s19 = int_to_ptr.vmem [resolvable:$false] %s546_s19 }
  0x41   : > { %s548_s21 = scalar_lea.vmem %s547_s19, 64  ;;  %p549_p8 = scmp.lt.s32.totalorder %s191_s4, %s547_s19 }
  0x42   : > { %p544_p9 = pnand %p542_p2, %p498_p5  ;;  %p550_p7 = scmp.lt.s32.totalorder %s548_s21, %s541_s28 }
  0x44   : > { %p545_p11 = pneg %p544_p9  ;;  %p551_p3 = por %p550_p7, %p549_p8 }
  0x46   : > { %p552_p6 = pnand %p551_p3, %p545_p11 }
  0x48   : > { %555 = shalt.err (!%p552_p6)
}
  0x49   : > { %441 = dma.hbm_to_vmem [thread:$0]  (!%p749_p0), %s794_s22, 32, %s191_s4, %s180_s6  }
  0x4a   : > { %p911_p13 = scmp.ne.s32.totalorder %s910_s11, 0 }
  0x4b   : > { %s821_s23 = sand.u32 (!%p911_p13), 1, %s626_s13   ;;  %p912_p8 = scmp.ne.s32.totalorder (!%p911_p13), %s904_s24, 0 }
  0x4c   : > { %206 = sbr.rel (%p911_p13) target bundleno = 115 (0x73), region = 32  ;;  %s824_s8 = sshll.u32 (!%p911_p13), %s821_s23, 1 }
  0x4d   : > { %s209_s10 = scalar_lea.sflag (!%p911_p13), [#allocation3], %s821_s23  ;;  %s212_s5 = scalar_lea.vmem (!%p911_p13), [#allocation2], %s824_s8 }
  0x53   : > { %609 = dma.done.wait (%p912_p8), %s209_s10, 32  }
  0x54   : > { %611 = vsyncadd (%p912_p8), %s209_s10, 4294967264  ;;  %s218_s9 = scalar_lea.sflag [#allocation6], %s821_s23  ;;  %s221_s11 = scalar_lea.vmem [#allocation5], %s824_s8 }
  0x55   : > { %613 = dma.done.wait (%p912_p8), %s218_s9, 32  }
  0x56   : > { %615 = vsyncadd (%p912_p8), %s218_s9, 4294967264  ;;  %p253_p0 = scmp.lt.s32.totalorder %s634_s15, 1  ;;  %v260_v0 = vlaneseq  ;;  %v257_v4 = vld [vmem:[%s212_s5] sm:$0x3]  ;;  %v258_v5 = vld [vmem:[%s221_s11] sm:$0x3] }
  0x57   : > { %s252_s24 = scalar_lea.vmem [#allocation7], %s824_s8  ;;  %s426_s28 = sshll.u32 %s634_s15, 5 }
  0x58   : > { %s254_s22 = scalar_select %p253_p0, %s634_s15, 1  ;;  %v261_v1 = vshrl.u32 %v260_v0, 7 }
  0x59   : > { %s297_s18 = sshll.u32 %s252_s24, 4  ;;  %s850_s21 = scalar_lea.hbm %s900_s3, %s426_s28  ;;  %s845_s18 = int_to_ptr.vmem [resolvable:$true] %s297_s18 }
  0x5a   : > { %s424_s4 = sshll.u32 %s254_s22, 1  ;;  %v262_v2 = vsub.s32 0, %v261_v1  ;;  %v272_v3 = vsub.s32 1, %v261_v1  ;;  %s283_s10 = scalar_lea.sflag [#allocation4], %s821_s23 }
  0x5b   : > { %s256_s7 = scalar_lea.vmem %s899_s2, %s424_s4  ;;  %s556_s5 = scalar_lea.vmem %s845_s18, 32 }
  0x5c   : > { %v259_v6 = vld [vmem:[%s256_s7] sm:$0x3]  ;;  %v263_v7 = vrot.slane %v258_v5, %v262_v2  ;;  %v273_v9 = vrot.slane %v258_v5, %v272_v3  ;;  %p557_p5 = scmp.ne.s32.totalorder %s845_s18, %s556_s5  ;;  %p913_p7 = scmp.ne.s32.totalorder %s905_s25, 0 }
  0x5d   : > { %v268_v8 = vrot.slane %v259_v6, %v262_v2  ;;  %v278_v10 = vrot.slane %v259_v6, %v272_v3  ;;  %s646_s15 = smov [#allocation7]  }
  0x5e   : > { %v264_v11 = vmul.f32 %v263_v7, %v257_v4  ;;  %v274_v12 = vmul.f32 %v273_v9, %v257_v4  ;;  %p558_p4 = pnand %p557_p5, %p913_p7  ;;  %s560_s8 = sshll.u32 %s646_s15, 4  ;;  %s561_s8 = int_to_ptr.vmem [resolvable:$false] %s560_s8 }
  0x5f   : > { %s562_s9 = scalar_lea.vmem %s561_s8, 64  ;;  %p563_p12 = scmp.lt.s32.totalorder %s845_s18, %s561_s8 }
  0x60   : > { %v269_v13 = vadd.f32 %v268_v8, %v264_v11  ;;  %v279_v14 = vadd.f32 %v278_v10, %v274_v12  ;;  %p559_p10 = pneg %p558_p4  ;;  %p564_p1 = scmp.lt.s32.totalorder %s562_s9, %s556_s5 }
  0x62   : > { %v280_v15 = vmax.f32 %v269_v13, %v279_v14  ;;  %p565_p2 = por %p564_p1, %p563_p12 }
  0x64   : > { %281 = vst [vmem:[%s252_s24] sm:$0x3] %v280_v15  ;;  %p566_p9 = pnand %p565_p2, %p559_p10 }
  0x66   : > { %569 = shalt.err (!%p566_p9)
}
  0x67   : > { %s570_s23 = scalar_lea.hbm %s850_s21, 32  ;;  %s574_s4 = scalar_lea.hbm %s900_s3, 64 }
  0x68   : > { %p571_p11 = scmp.ne.s32.totalorder %s850_s21, %s570_s23  ;;  %p575_p13 = scmp.lt.u32.totalorder %s850_s21, %s900_s3 }
  0x69   : > { %p576_p8 = scmp.lt.u32.totalorder %s574_s4, %s570_s23  ;;  %p578_p5 = scmp.lt.u32.totalorder %s570_s23, %s850_s21 }
  0x6a   : > { %p572_p3 = pnand %p571_p11, %p913_p7 }
  0x6b   : > { %p577_p0 = por %p576_p8, %p575_p13 }
  0x6c   : > { %p573_p6 = pneg %p572_p3 }
  0x6d   : > { %p579_p4 = por %p578_p5, %p577_p0 }
  0x6f   : > { %p580_p10 = pnand %p579_p4, %p573_p6 }
  0x71   : > { %583 = shalt.err (!%p580_p10)
}
  0x72   : > { %433 = dma.vmem_to_hbm [thread:$0]  (%p913_p7), %s845_s18, 32, %s850_s21, %s283_s10  }
  0x73 PF: > { %s309_s7 = sand.u32 1, %s622_s12   ;;  %p914_p12 = scmp.ne.s32.totalorder %s906_s27, 0 }
  0x74   : > { %p915_p1 = scmp.ge.s32.totalorder %s642_s17, 2  ;;  %s310_s24 = scalar_lea.sflag [#allocation4], %s309_s7 }
  0x76   : > { %p443_p2 = pnand %p915_p1, %p914_p12 }
  0x78   : > { %617 = dma.done.wait (!%p443_p2), %s310_s24, 32  }
  0x79   : > { %619 = vsyncadd (!%p443_p2), %s310_s24, 4294967264  ;;  %s22_s17 = sadd.s32 1, %s642_s17   ;;  %s916_s12 = smov %s626_s13 }
  0x7a   : > { %p19_p9 = scmp.ge.s32.totalorder %s22_s17, 4   ;;  %s917_s13 = smov %s630_s14 }
  0x7b   : > { %s918_s14 = smov %s723_s26  ;;  %s919_s15 = smov %s638_s16 }
  0x7c   : > { %s920_s16 = smov %s922_s20  ;;  %21 = sbr.rel (!%p19_p9) target bundleno = 8 (0x8), region = 93 }
  0x83   :  { %315 = vsyncpa [#allocation3], 1 }
  0x84   :  { %317 = vsyncpa [#allocation3 + $0x1], 1 }
  0x85   :  { %318 = vsyncpa [#allocation6], 1 }
  0x86   :  { %320 = vsyncpa [#allocation6 + $0x1], 1 }
  0x87   :  { %321 = vsyncpa [#allocation4], 1 }
  0x88   :  { %323 = vsyncpa [#allocation4 + $0x1], 1 }

</bundles_post_ra>
